<compile_context>
chip_gen: v6e
topology: v6e:2x2x1
jax: 0.10.0
libtpu: 0.0.40
codegen_flags: <defaults>
</compile_context>

<pallas_src>
import functools

import jax
import jax.numpy as jnp
import numpy as np
from jax import lax
from jax.experimental import pallas as pl
from jax.experimental.pallas import tpu as pltpu


def _leaky_relu(x, slope=0.1):
    return jnp.where(x >= 0, x, slope * x)


def nonlocal_kernel(x_ref, wphi_ref, wtheta_ref, wright_ref, wmask_ref,
                    wtrans_ref, out_ref,
                    theta_scr, phi_scr, right_scr, acc_scr,
                    *, fuse_mask, col_tile):
    _, C, HW = x_ref.shape
    N = HW // 2
    CI = C // 2
    dt = x_ref.dtype                         # I/O + small-matmul operand dtype
    mdt = theta_scr.dtype                    # MXU operand dtype for N^2 matmuls
    approx_recip = jnp.dtype(mdt) != jnp.dtype(jnp.float32)
    num_tiles = N // col_tile

    x = x_ref[0]                             # (C, HW)
    x_a = x[:, :N]                           # 128-aligned lane slices (views)
    x_b = x[:, N:]

    # Stack the two spatial halves along sublanes: (2C, N).  Together with the
    # block-diagonal weights this reproduces the PyTorch `.view(b, c, -1)`
    # reinterpretation and lets each attention slab be built with a single
    # K=C contraction.
    xs = jnp.concatenate([x_a, x_b], axis=0)                            # (2C, N)

    # 1x1-conv projections (channel matmuls); f32 accumulation on the MXU, the
    # results land in VMEM scratch in the MXU operand dtype (bf16 by default
    # on f32 inputs — review feedback for v6e/v7x).
    theta_scr[...] = jnp.dot(wtheta_ref[...], xs,
                             preferred_element_type=jnp.float32).astype(mdt)
    phi_scr[...] = jnp.dot(wphi_ref[...], xs,
                           preferred_element_type=jnp.float32).astype(mdt)
    right_scr[...] = jnp.dot(wright_ref[...], xs,
                             preferred_element_type=jnp.float32).astype(mdt)
    acc_scr[...] = jnp.zeros_like(acc_scr)

    contract_rows = (((0,), (0,)), ((), ()))    # contract sublane rows: lhs^T @ rhs
    mk_kn = (((1,), (0,)), ((), ()))            # canonical (M,K) @ (K,N)

    # Column-slab loop over the (N, N) attention matrix; only a (col_tile, N)
    # slab is live at a time.  The slab is built transposed so softmax(dim=1)
    # reduces over the resident lane axis and the apply matmul needs no slab
    # transpose.  fori_loop bounds live ranges (review feedback).
    def slab_body(t, carry):
        start = pl.multiple_of(t * col_tile, 128)
        sl = pl.ds(start, col_tile)
        phi_slab = phi_scr[:, sl]                                        # (C, ct)
        a_t = lax.dot_general(phi_slab, theta_scr[...], contract_rows,
                              preferred_element_type=jnp.float32)        # (ct, N)
        a_t = a_t - jnp.max(a_t, axis=1, keepdims=True)
        p_t = jnp.exp(a_t)                                               # (ct, N)
        inv_d = pl.reciprocal(jnp.sum(p_t, axis=1, keepdims=True),
                              approx=approx_recip)                       # (ct, 1)
        p_s = (p_t * inv_d).astype(mdt)                                  # (ct, N)
        r_t = right_scr[:, sl]                                           # (R, ct)
        acc_scr[...] += lax.dot_general(r_t, p_s, mk_kn,
                                        preferred_element_type=jnp.float32)
        return carry

    lax.fori_loop(0, num_tiles, slab_body, 0)

    acc = acc_scr[...]                                                   # (R, N)
    if fuse_mask:
        # conv_mask already folded into the right operand (w_mask @ w_g).
        mask_a = acc[:C]                                                 # (C, N)
        mask_b = acc[C:]                                                 # (C, N)
    else:
        wm = wmask_ref[...]                                              # (C, CI)
        mask_a = jnp.dot(wm, acc[:CI].astype(dt),
                         preferred_element_type=jnp.float32)
        mask_b = jnp.dot(wm, acc[CI:].astype(dt),
                         preferred_element_type=jnp.float32)

    w_tr = wtrans_ref[...]                                               # (C, C)

    def finish(mask_half, x_half):
        g1 = _leaky_relu(mask_half)
        g2 = jnp.dot(w_tr, g1.astype(dt), preferred_element_type=jnp.float32)
        g3 = _leaky_relu(g2)
        return (g3 + x_half.astype(jnp.float32)).astype(out_ref.dtype)

    # Per-half stores — no (C, HW) concatenate, halves are 128-lane aligned.
    out_ref[0, :, :N] = finish(mask_a, x_a)
    out_ref[0, :, N:] = finish(mask_b, x_b)


def _block_diag2(w):
    """[[w, 0], [0, w]] — applies w independently to each stacked half."""
    o, i = w.shape
    z = jnp.zeros((o, i), w.dtype)
    return jnp.concatenate(
        [jnp.concatenate([w, z], axis=1),
         jnp.concatenate([z, w], axis=1)], axis=0)


def _tpu_vmem_capacity_bytes():
    """Physical per-core VMEM; conservative (v7x-sized) fallback if unknown."""
    try:
        return int(pltpu.get_tpu_info().vmem_capacity_bytes)
    except Exception:
        return 64 << 20


def _pick_col_tile(n, vmem_cap):
    # Generation-aware slab width (review feedback):
    #  * 64 MiB-VMEM chips (v7x): cap at 256 (128 for very large N),
    #  * 128 MiB chips (v5e/v6e): go up to 1024 to amortize per-slab overheads.
    if vmem_cap <= (64 << 20):
        max_ct = 128 if n > 4096 else 256
    else:
        max_ct = 1024
    for cand in (1024, 512, 256, 128):
        if cand <= max_ct and n % cand == 0:
            return cand
    return 128


def _vmem_limit_bytes(c, hw, itemsize, mxu_itemsize, r_rows, col_tile, vmem_cap):
    """Scoped-VMEM request sized from the working set.  No 2x hedge; capped
    well below physical VMEM so the compiler keeps headroom (review feedback):
    ~48 MiB on 64 MiB chips (v7x), ~96 MiB on 128 MiB chips (v5e/v6e)."""
    n = hw // 2
    f32 = 4
    est = 2 * 2 * c * hw * itemsize                        # dbl-buffered x / out blocks
    w_elems = 2 * c * (2 * c) + r_rows * (2 * c) + c * (c // 2) + c * c
    est += 2 * w_elems * itemsize                          # weight blocks
    est += 2 * c * n * itemsize                            # xs (stacked halves)
    est += (2 * c + r_rows) * n * mxu_itemsize             # theta/phi/right scratch
    est += r_rows * n * f32                                # f32 accumulator scratch
    est += 3 * col_tile * n * f32                          # a_t / p_t / scaled slab
    est += (r_rows * n + r_rows * col_tile) * f32          # part + r_t temporaries
    est += 2 * c * n * f32                                 # finish-path temporaries
    est = int(est * 1.25) + (2 << 20)                      # compiler-scratch headroom
    cap = (vmem_cap * 3) // 4
    return int(min(max(est, 32 << 20), cap))


def nonlocal_block(x, w_phi, w_theta, w_g, w_mask, w_trans, *, mxu_dtype=None):
    b, c, h, w = x.shape
    hw = h * w
    assert c % 2 == 0, "requires an even channel count"
    assert hw % 2 == 0, "requires even H*W"
    n = hw // 2
    # Keep the spatial halves on vreg lane-tile boundaries so half-slices are
    # free views instead of relayout copies.
    assert n % 128 == 0, "H*W/2 must be a multiple of 128 (pad spatially if not)"
    ci = c // 2
    dt = x.dtype

    # bf16 operands for the two N^2-scale MXU matmuls (v6e/v7x feedback: ~4x
    # MXU rate, half the slab VMEM).  Force mxu_dtype=jnp.float32 for the
    # full-precision path (validated below at tight tolerance).
    if mxu_dtype is None:
        mxu_dtype = jnp.bfloat16 if dt == jnp.float32 else dt
    mxu_dtype = jnp.dtype(mxu_dtype)

    # Re-associate conv_mask into the attention-apply matmul while the stacked
    # M dimension (2C) still fits within an MXU tile.
    fuse_mask = (2 * c) <= 256

    w_phi_bd = _block_diag2(w_phi).astype(dt)                  # (C, 2C)
    w_theta_bd = _block_diag2(w_theta).astype(dt)              # (C, 2C)
    if fuse_mask:
        w_gm = jnp.dot(w_mask, w_g, preferred_element_type=jnp.float32)
        w_right_bd = _block_diag2(w_gm).astype(dt)             # (2C, 2C)
    else:
        w_right_bd = _block_diag2(w_g).astype(dt)              # (C, 2C)
    w_mask_c = w_mask.astype(dt)
    w_trans_c = w_trans.astype(dt)
    r_rows = w_right_bd.shape[0]

    vmem_cap = _tpu_vmem_capacity_bytes()
    col_tile = _pick_col_tile(n, vmem_cap)
    vmem_limit = _vmem_limit_bytes(c, hw, dt.itemsize, mxu_dtype.itemsize,
                                   r_rows, col_tile, vmem_cap)

    # Advisory cost estimate so XLA can schedule/overlap around the call.
    mask_flops = 0 if fuse_mask else 2 * (2 * c * ci * n)
    flops = b * (2 * (2 * c) * c * n            # theta projection
                 + 2 * (2 * c) * c * n          # phi projection
                 + 2 * (2 * c) * r_rows * n     # right projection
                 + 2 * c * n * n                # attention logits
                 + 2 * r_rows * n * n           # attention apply
                 + mask_flops
                 + 2 * (2 * c * c * n))         # conv_transfer on both halves
    transcendentals = b * (n * n + n)
    weight_bytes = (w_phi_bd.size + w_theta_bd.size + w_right_bd.size
                    + w_mask_c.size + w_trans_c.size) * dt.itemsize
    bytes_accessed = 2 * b * c * hw * dt.itemsize + weight_bytes
    cost = pl.CostEstimate(flops=int(flops),
                           transcendentals=int(transcendentals),
                           bytes_accessed=int(bytes_accessed))

    x_flat = x.reshape(b, c, hw)
    kernel = functools.partial(nonlocal_kernel, fuse_mask=fuse_mask,
                               col_tile=col_tile)

    out = pl.pallas_call(
        kernel,
        out_shape=jax.ShapeDtypeStruct((b, c, hw), dt),
        grid_spec=pltpu.PrefetchScalarGridSpec(
            num_scalar_prefetch=0,
            grid=(b,),
            in_specs=[
                pl.BlockSpec((1, c, hw), lambda i: (i, 0, 0)),
                # Grid-invariant weight blocks (constant index_map) — the
                # pipeline revisits the same block, so no per-step re-DMA.
                pl.BlockSpec((c, 2 * c), lambda i: (0, 0)),
                pl.BlockSpec((c, 2 * c), lambda i: (0, 0)),
                pl.BlockSpec((r_rows, 2 * c), lambda i: (0, 0)),
                pl.BlockSpec((c, ci), lambda i: (0, 0)),
                pl.BlockSpec((c, c), lambda i: (0, 0)),
            ],
            out_specs=pl.BlockSpec((1, c, hw), lambda i: (i, 0, 0)),
            scratch_shapes=[
                pltpu.VMEM((c, n), mxu_dtype),        # theta projections
                pltpu.VMEM((c, n), mxu_dtype),        # phi projections
                pltpu.VMEM((r_rows, n), mxu_dtype),   # (mask o g) projections
                pltpu.VMEM((r_rows, n), jnp.float32),  # attention-apply accumulator
            ],
        ),
        compiler_params=pltpu.CompilerParams(
            # Batch axis is parallel: keep B >= 2 on v7x so both TensorCores
            # receive grid work (B=2 below).
            dimension_semantics=("parallel",),
            vmem_limit_bytes=vmem_limit,
        ),
        cost_estimate=cost,
    )(x_flat, w_phi_bd, w_theta_bd, w_right_bd, w_mask_c, w_trans_c)
    return out.reshape(b, c, h, w)


def reference(x, w_phi, w_theta, w_g, w_mask, w_trans):
    """Pure-JAX transcription of the PyTorch forward (including the view quirk)."""
    b, c, h, w = x.shape

    def conv1x1(t, W):  # t: (b, cin, h, w), W: (cout, cin)
        return jnp.einsum('oi,bihw->bohw', W, t)

    x_phi = conv1x1(x, w_phi).reshape(b, c, -1)
    x_theta = conv1x1(x, w_theta).reshape(b, c, -1).transpose(0, 2, 1)
    x_g = conv1x1(x, w_g).reshape(b, c, -1).transpose(0, 2, 1)
    a = jnp.matmul(x_theta, x_phi)
    a = jax.nn.softmax(a, axis=1)
    y = jnp.matmul(a, x_g)
    y = y.transpose(0, 2, 1).reshape(b, c // 2, h, w)
    mask = conv1x1(y, w_mask)
    g1 = jnp.where(mask >= 0, mask, 0.1 * mask)
    g2 = conv1x1(g1, w_trans)
    g3 = jnp.where(g2 >= 0, g2, 0.1 * g2)
    return g3 + x


if __name__ == "__main__":
    B, C, H, W = 2, 4, 16, 16
    CI = C // 2

    key = jax.random.PRNGKey(0)
    kx, k1, k2, k3, k4, k5 = jax.random.split(key, 6)
    x = jax.random.normal(kx, (B, C, H, W), dtype=jnp.float32)
    # 1x1 conv weights as plain (out, in) matrices.
    w_phi = 0.2 * jax.random.normal(k1, (CI, C), dtype=jnp.float32)
    w_theta = 0.2 * jax.random.normal(k2, (CI, C), dtype=jnp.float32)
    w_g = 0.2 * jax.random.normal(k3, (CI, C), dtype=jnp.float32)
    w_mask = 0.2 * jax.random.normal(k4, (C, CI), dtype=jnp.float32)
    w_trans = 0.2 * jax.random.normal(k5, (C, C), dtype=jnp.float32)

    ref = reference(x, w_phi, w_theta, w_g, w_mask, w_trans)

    # Full-precision MXU path: tight tolerance against the f32 reference.
    out_f32 = nonlocal_block(x, w_phi, w_theta, w_g, w_mask, w_trans,
                             mxu_dtype=jnp.float32)
    out_f32 = jax.block_until_ready(out_f32)
    np.testing.assert_allclose(np.asarray(out_f32), np.asarray(ref),
                               rtol=1e-4, atol=1e-4)

    # Default path (bf16 operands for the N^2-scale MXU matmuls on v6e/v7x):
    # validated at a relaxed tolerance per review feedback.
    out_bf16 = nonlocal_block(x, w_phi, w_theta, w_g, w_mask, w_trans)
    out_bf16 = jax.block_until_ready(out_bf16)
    np.testing.assert_allclose(np.asarray(out_bf16), np.asarray(ref),
                               rtol=2e-2, atol=2e-2)

    print("KERNEL_OK")
</pallas_src>

<mosaic_0001>
module attributes {stable_mosaic.version = 11 : i64} {
  func.func @nonlocal_kernel(%arg0: i32, %arg1: memref<1x4x256xf32, #tpu.memory_space<vmem>>, %arg2: memref<4x8xf32, #tpu.memory_space<vmem>>, %arg3: memref<4x8xf32, #tpu.memory_space<vmem>>, %arg4: memref<8x8xf32, #tpu.memory_space<vmem>>, %arg5: memref<4x2xf32, #tpu.memory_space<vmem>>, %arg6: memref<4x4xf32, #tpu.memory_space<vmem>>, %arg7: memref<1x4x256xf32, #tpu.memory_space<vmem>>, %arg8: memref<4x128xf32, #tpu.memory_space<vmem>>, %arg9: memref<4x128xf32, #tpu.memory_space<vmem>>, %arg10: memref<8x128xf32, #tpu.memory_space<vmem>>, %arg11: memref<8x128xf32, #tpu.memory_space<vmem>>) attributes {dimension_semantics = [#tpu.dimension_semantics<parallel>], iteration_bounds = array<i64: 2>, scalar_prefetch = 0 : i64, scratch_operands = 4 : i64, tpu.core_type = #tpu.core_type<tc>, window_params = [{transform_indices = @transform_0, window_bounds = array<i64: 1, 4, 256>}, {pipeline_mode = #tpu.pipeline_mode<synchronous>, transform_indices = @transform_1, window_bounds = array<i64: 4, 8>}, {pipeline_mode = #tpu.pipeline_mode<synchronous>, transform_indices = @transform_2, window_bounds = array<i64: 4, 8>}, {pipeline_mode = #tpu.pipeline_mode<synchronous>, transform_indices = @transform_3, window_bounds = array<i64: 8, 8>}, {pipeline_mode = #tpu.pipeline_mode<synchronous>, transform_indices = @transform_4, window_bounds = array<i64: 4, 2>}, {pipeline_mode = #tpu.pipeline_mode<synchronous>, transform_indices = @transform_5, window_bounds = array<i64: 4, 4>}, {transform_indices = @transform_6, window_bounds = array<i64: 1, 4, 256>}]} {
    %c0 = arith.constant 0 : index
    %c0_0 = arith.constant 0 : index
    %c0_1 = arith.constant 0 : index
    %0 = vector.load %arg1[%c0, %c0_0, %c0_1] : memref<1x4x256xf32, #tpu.memory_space<vmem>>, vector<1x4x256xf32>
    %1 = vector.shape_cast %0 : vector<1x4x256xf32> to vector<4x256xf32>
    %2 = vector.extract_strided_slice %1 {offsets = [0, 0], sizes = [4, 128], strides = [1, 1]} : vector<4x256xf32> to vector<4x128xf32>
    %3 = vector.extract_strided_slice %1 {offsets = [0, 128], sizes = [4, 128], strides = [1, 1]} : vector<4x256xf32> to vector<4x128xf32>
    %4 = tpu.concatenate %2, %3 in 0 : vector<4x128xf32>, vector<4x128xf32> -> vector<8x128xf32>
    %c0_2 = arith.constant 0 : index
    %c0_3 = arith.constant 0 : index
    %5 = vector.load %arg3[%c0_2, %c0_3] : memref<4x8xf32, #tpu.memory_space<vmem>>, vector<4x8xf32>
    %cst = arith.constant dense<0.000000e+00> : vector<4x128xf32>
    %6 = tpu.matmul %5, %4, %cst {dimension_numbers = #tpu.dot_dimension_numbers<[1], [0], [0], [1], [0, 0, 1, 1], [], []>} : vector<4x8xf32>, vector<8x128xf32>, vector<4x128xf32> -> vector<4x128xf32>
    %c0_4 = arith.constant 0 : index
    %c0_5 = arith.constant 0 : index
    %7 = vector.load %arg8[%c0_4, %c0_5] : memref<4x128xf32, #tpu.memory_space<vmem>>, vector<4x128xf32>
    tpu.vector_store %arg8[%c0_4, %c0_5], %6 {strides = array<i32>} : memref<4x128xf32, #tpu.memory_space<vmem>>, vector<4x128xf32>,
    %c0_6 = arith.constant 0 : index
    %c0_7 = arith.constant 0 : index
    %8 = vector.load %arg2[%c0_6, %c0_7] : memref<4x8xf32, #tpu.memory_space<vmem>>, vector<4x8xf32>
    %cst_8 = arith.constant dense<0.000000e+00> : vector<4x128xf32>
    %9 = tpu.matmul %8, %4, %cst_8 {dimension_numbers = #tpu.dot_dimension_numbers<[1], [0], [0], [1], [0, 0, 1, 1], [], []>} : vector<4x8xf32>, vector<8x128xf32>, vector<4x128xf32> -> vector<4x128xf32>
    %c0_9 = arith.constant 0 : index
    %c0_10 = arith.constant 0 : index
    %10 = vector.load %arg9[%c0_9, %c0_10] : memref<4x128xf32, #tpu.memory_space<vmem>>, vector<4x128xf32>
    tpu.vector_store %arg9[%c0_9, %c0_10], %9 {strides = array<i32>} : memref<4x128xf32, #tpu.memory_space<vmem>>, vector<4x128xf32>,
    %c0_11 = arith.constant 0 : index
    %c0_12 = arith.constant 0 : index
    %11 = vector.load %arg4[%c0_11, %c0_12] : memref<8x8xf32, #tpu.memory_space<vmem>>, vector<8x8xf32>
    %cst_13 = arith.constant dense<0.000000e+00> : vector<8x128xf32>
    %12 = tpu.matmul %11, %4, %cst_13 {dimension_numbers = #tpu.dot_dimension_numbers<[1], [0], [0], [1], [0, 0, 1, 1], [], []>} : vector<8x8xf32>, vector<8x128xf32>, vector<8x128xf32> -> vector<8x128xf32>
    %c0_14 = arith.constant 0 : index
    %c0_15 = arith.constant 0 : index
    %13 = vector.load %arg10[%c0_14, %c0_15] : memref<8x128xf32, #tpu.memory_space<vmem>>, vector<8x128xf32>
    tpu.vector_store %arg10[%c0_14, %c0_15], %12 {strides = array<i32>} : memref<8x128xf32, #tpu.memory_space<vmem>>, vector<8x128xf32>,
    %cst_16 = arith.constant 0.000000e+00 : f32
    %14 = vector.broadcast %cst_16 : f32 to vector<8x128xf32>
    %c0_17 = arith.constant 0 : index
    %c0_18 = arith.constant 0 : index
    %15 = vector.load %arg11[%c0_17, %c0_18] : memref<8x128xf32, #tpu.memory_space<vmem>>, vector<8x128xf32>
    tpu.vector_store %arg11[%c0_17, %c0_18], %14 {strides = array<i32>} : memref<8x128xf32, #tpu.memory_space<vmem>>, vector<8x128xf32>,
    %c0_i32 = arith.constant 0 : i32
    %c128_i32 = arith.constant 128 : i32
    %16 = arith.muli %c0_i32, %c128_i32 : i32
    %17 = tpu.assume_multiple %16, 128 : i32
    %c0_19 = arith.constant 0 : index
    %18 = arith.index_cast %17 : i32 to index
    %19 = vector.load %arg9[%c0_19, %18] : memref<4x128xf32, #tpu.memory_space<vmem>>, vector<4x128xf32>
    %c0_20 = arith.constant 0 : index
    %c0_21 = arith.constant 0 : index
    %20 = vector.load %arg8[%c0_20, %c0_21] : memref<4x128xf32, #tpu.memory_space<vmem>>, vector<4x128xf32>
    %cst_22 = arith.constant dense<0.000000e+00> : vector<128x128xf32>
    %21 = tpu.matmul %19, %20, %cst_22 {dimension_numbers = #tpu.dot_dimension_numbers<[0], [0], [1], [1], [0, 1, 1, 1], [], []>} : vector<4x128xf32>, vector<4x128xf32>, vector<128x128xf32> -> vector<128x128xf32>
    %cst_23 = arith.constant dense<0xFF800000> : vector<128xf32>
    %22 = vector.multi_reduction <maximumf>, %21, %cst_23 [1] : vector<128x128xf32> to vector<128xf32>
    %23 = vector.shape_cast %22 : vector<128xf32> to vector<128x1xf32>
    %24 = vector.broadcast %23 : vector<128x1xf32> to vector<128x128xf32>
    %25 = arith.subf %21, %24 : vector<128x128xf32>
    %26 = math.exp %25 : vector<128x128xf32>
    %cst_24 = arith.constant dense<0.000000e+00> : vector<128xf32>
    %27 = vector.multi_reduction <add>, %26, %cst_24 [1] : vector<128x128xf32> to vector<128xf32>
    %28 = vector.shape_cast %27 : vector<128xf32> to vector<128x1xf32>
    %29 = tpu.reciprocal %28 : vector<128x1xf32> -> vector<128x1xf32>
    %30 = vector.broadcast %29 : vector<128x1xf32> to vector<128x128xf32>
    %31 = arith.mulf %26, %30 : vector<128x128xf32>
    %c0_25 = arith.constant 0 : index
    %32 = arith.index_cast %17 : i32 to index
    %33 = vector.load %arg10[%c0_25, %32] : memref<8x128xf32, #tpu.memory_space<vmem>>, vector<8x128xf32>
    %c0_26 = arith.constant 0 : index
    %c0_27 = arith.constant 0 : index
    %34 = vector.load %arg11[%c0_26, %c0_27] : memref<8x128xf32, #tpu.memory_space<vmem>>, vector<8x128xf32>
    %cst_28 = arith.constant dense<0.000000e+00> : vector<8x128xf32>
    %35 = tpu.matmul %33, %31, %cst_28 {dimension_numbers = #tpu.dot_dimension_numbers<[1], [0], [0], [1], [0, 0, 1, 1], [], []>} : vector<8x128xf32>, vector<128x128xf32>, vector<8x128xf32> -> vector<8x128xf32>
    %36 = arith.addf %34, %35 : vector<8x128xf32>
    %c0_29 = arith.constant 0 : index
    %c0_30 = arith.constant 0 : index
    %37 = vector.load %arg11[%c0_29, %c0_30] : memref<8x128xf32, #tpu.memory_space<vmem>>, vector<8x128xf32>
    tpu.vector_store %arg11[%c0_29, %c0_30], %36 {strides = array<i32>} : memref<8x128xf32, #tpu.memory_space<vmem>>, vector<8x128xf32>,
    %c1_i32 = arith.constant 1 : i32
    %c0_31 = arith.constant 0 : index
    %c0_32 = arith.constant 0 : index
    %38 = vector.load %arg11[%c0_31, %c0_32] : memref<8x128xf32, #tpu.memory_space<vmem>>, vector<8x128xf32>
    %39 = vector.extract_strided_slice %38 {offsets = [0, 0], sizes = [4, 128], strides = [1, 1]} : vector<8x128xf32> to vector<4x128xf32>
    %40 = vector.extract_strided_slice %38 {offsets = [4, 0], sizes = [4, 128], strides = [1, 1]} : vector<8x128xf32> to vector<4x128xf32>
    %c0_33 = arith.constant 0 : index
    %c0_34 = arith.constant 0 : index
    %41 = vector.load %arg6[%c0_33, %c0_34] : memref<4x4xf32, #tpu.memory_space<vmem>>, vector<4x4xf32>
    %cst_35 = arith.constant 0.000000e+00 : f32
    %42 = vector.broadcast %cst_35 : f32 to vector<4x128xf32>
    %43 = arith.cmpf oge, %39, %42 : vector<4x128xf32>
    %cst_36 = arith.constant 1.000000e-01 : f32
    %44 = vector.broadcast %cst_36 : f32 to vector<4x128xf32>
    %45 = arith.mulf %44, %39 : vector<4x128xf32>
    %46 = arith.select %43, %39, %45 : vector<4x128xi1>, vector<4x128xf32>
    %cst_37 = arith.constant dense<0.000000e+00> : vector<4x128xf32>
    %47 = tpu.matmul %41, %46, %cst_37 {dimension_numbers = #tpu.dot_dimension_numbers<[1], [0], [0], [1], [0, 0, 1, 1], [], []>} : vector<4x4xf32>, vector<4x128xf32>, vector<4x128xf32> -> vector<4x128xf32>
    %cst_38 = arith.constant 0.000000e+00 : f32
    %48 = vector.broadcast %cst_38 : f32 to vector<4x128xf32>
    %49 = arith.cmpf oge, %47, %48 : vector<4x128xf32>
    %cst_39 = arith.constant 1.000000e-01 : f32
    %50 = vector.broadcast %cst_39 : f32 to vector<4x128xf32>
    %51 = arith.mulf %50, %47 : vector<4x128xf32>
    %52 = arith.select %49, %47, %51 : vector<4x128xi1>, vector<4x128xf32>
    %53 = arith.addf %52, %2 : vector<4x128xf32>
    %c0_40 = arith.constant 0 : index
    %c0_41 = arith.constant 0 : index
    %c0_42 = arith.constant 0 : index
    %54 = vector.load %arg7[%c0_40, %c0_41, %c0_42] : memref<1x4x256xf32, #tpu.memory_space<vmem>>, vector<1x4x128xf32>
    %55 = vector.shape_cast %54 : vector<1x4x128xf32> to vector<4x128xf32>
    %56 = vector.shape_cast %53 : vector<4x128xf32> to vector<1x4x128xf32>
    tpu.vector_store %arg7[%c0_40, %c0_41, %c0_42], %56 {strides = array<i32>} : memref<1x4x256xf32, #tpu.memory_space<vmem>>, vector<1x4x128xf32>,
    %cst_43 = arith.constant 0.000000e+00 : f32
    %57 = vector.broadcast %cst_43 : f32 to vector<4x128xf32>
    %58 = arith.cmpf oge, %40, %57 : vector<4x128xf32>
    %cst_44 = arith.constant 1.000000e-01 : f32
    %59 = vector.broadcast %cst_44 : f32 to vector<4x128xf32>
    %60 = arith.mulf %59, %40 : vector<4x128xf32>
    %61 = arith.select %58, %40, %60 : vector<4x128xi1>, vector<4x128xf32>
    %cst_45 = arith.constant dense<0.000000e+00> : vector<4x128xf32>
    %62 = tpu.matmul %41, %61, %cst_45 {dimension_numbers = #tpu.dot_dimension_numbers<[1], [0], [0], [1], [0, 0, 1, 1], [], []>} : vector<4x4xf32>, vector<4x128xf32>, vector<4x128xf32> -> vector<4x128xf32>
    %cst_46 = arith.constant 0.000000e+00 : f32
    %63 = vector.broadcast %cst_46 : f32 to vector<4x128xf32>
    %64 = arith.cmpf oge, %62, %63 : vector<4x128xf32>
    %cst_47 = arith.constant 1.000000e-01 : f32
    %65 = vector.broadcast %cst_47 : f32 to vector<4x128xf32>
    %66 = arith.mulf %65, %62 : vector<4x128xf32>
    %67 = arith.select %64, %62, %66 : vector<4x128xi1>, vector<4x128xf32>
    %68 = arith.addf %67, %3 : vector<4x128xf32>
    %c0_48 = arith.constant 0 : index
    %c0_49 = arith.constant 0 : index
    %c128 = arith.constant 128 : index
    %69 = vector.load %arg7[%c0_48, %c0_49, %c128] : memref<1x4x256xf32, #tpu.memory_space<vmem>>, vector<1x4x128xf32>
    %70 = vector.shape_cast %69 : vector<1x4x128xf32> to vector<4x128xf32>
    %71 = vector.shape_cast %68 : vector<4x128xf32> to vector<1x4x128xf32>
    tpu.vector_store %arg7[%c0_48, %c0_49, %c128], %71 {strides = array<i32>} : memref<1x4x256xf32, #tpu.memory_space<vmem>>, vector<1x4x128xf32>,
    return
  }
  func.func @transform_0(%arg0: i32) -> (i32, i32, i32) {
    %c0_i32 = arith.constant 0 : i32
    %c0_i32_0 = arith.constant 0 : i32
    %c0_i32_1 = arith.constant 0 : i32
    return %arg0, %c0_i32, %c0_i32_0 : i32, i32, i32
  }
  func.func @transform_1(%arg0: i32) -> (i32, i32) {
    %c0_i32 = arith.constant 0 : i32
    %c0_i32_0 = arith.constant 0 : i32
    %c0_i32_1 = arith.constant 0 : i32
    return %c0_i32, %c0_i32_0 : i32, i32
  }
  func.func @transform_2(%arg0: i32) -> (i32, i32) {
    %c0_i32 = arith.constant 0 : i32
    %c0_i32_0 = arith.constant 0 : i32
    %c0_i32_1 = arith.constant 0 : i32
    return %c0_i32, %c0_i32_0 : i32, i32
  }
  func.func @transform_3(%arg0: i32) -> (i32, i32) {
    %c0_i32 = arith.constant 0 : i32
    %c0_i32_0 = arith.constant 0 : i32
    %c0_i32_1 = arith.constant 0 : i32
    return %c0_i32, %c0_i32_0 : i32, i32
  }
  func.func @transform_4(%arg0: i32) -> (i32, i32) {
    %c0_i32 = arith.constant 0 : i32
    %c0_i32_0 = arith.constant 0 : i32
    %c0_i32_1 = arith.constant 0 : i32
    return %c0_i32, %c0_i32_0 : i32, i32
  }
  func.func @transform_5(%arg0: i32) -> (i32, i32) {
    %c0_i32 = arith.constant 0 : i32
    %c0_i32_0 = arith.constant 0 : i32
    %c0_i32_1 = arith.constant 0 : i32
    return %c0_i32, %c0_i32_0 : i32, i32
  }
  func.func @transform_6(%arg0: i32) -> (i32, i32, i32) {
    %c0_i32 = arith.constant 0 : i32
    %c0_i32_0 = arith.constant 0 : i32
    %c0_i32_1 = arith.constant 0 : i32
    return %arg0, %c0_i32, %c0_i32_0 : i32, i32, i32
  }
}

</mosaic_0001>

<bundles_post_ra>
// kernel: tpu_custom_call.1
= control target key start
LH: loop header
LB: loop body
LE: loop exit
PB: predicated region body
PF: predicated region fallthrough
CT: control target
= control target key end

     0   :  { %11 = vsyncpa [#allocation7], 0  ;;  %s2077_s0 = inlined_call_operand.hbm [shape: f32[2,4,256], index: 0, kind: input, shape index: {}]   ;;  %s2078_s1 = inlined_call_operand.vmem [shape: f32[4,8], index: 1, kind: input, shape index: {}]   ;;  %s2079_s2 = inlined_call_operand.hbm [shape: f32[4,8], index: 2, kind: input, shape index: {}]   ;;  %s2080_s3 = inlined_call_operand.hbm [shape: f32[8,8], index: 3, kind: input, shape index: {}]   ;;  %s2081_s4 = inlined_call_operand.vmem [shape: f32[4,2], index: 4, kind: input, shape index: {}]   ;;  %s2082_s5 = inlined_call_operand.vmem [shape: f32[4,4], index: 5, kind: input, shape index: {}]   ;;  %s2083_s6 = inlined_call_operand.hbm [shape: f32[2,4,256], index: 6, kind: output, shape index: {}]  }
   0x1   :  { %13 = vsyncpa [#allocation7 + $0x1], 0 }
   0x2   :  { %14 = vsyncpa [#allocation10], 0 }
   0x3   :  { %15 = vsyncpa [#allocation8], 0 }
   0x4   :  { %17 = vsyncpa [#allocation8 + $0x1], 0  ;;  %s1741_s21 = smov 0   ;;  %s1743_s22 = smov 0  }
   0x5   :  { %s1745_s23 = smov 0   ;;  %s1747_s24 = smov 0  }
   0x6 LB: > { %s1762_s4 = sadd.s32 4294967295, %s1698_s24   ;;  %s1242_s25 = sadd.s32 4294967294, %s1698_s24   ;;  %s1698_s24 = sphi %s1747_s24, %s2105_s24   ;;  %s1694_s23 = sphi %s1745_s23, %s2104_s23   ;;  %s1690_s22 = sphi %s1743_s22, %s2103_s22   ;;  %s1686_s21 = sphi %s1741_s21, %s2102_s21  }
   0x7   : > { %p43_p0 = scmp.ne.s32.totalorder %s1690_s22, %s1686_s21  ;;  %p2084_p1 = scmp.eq.s32.totalorder %s1762_s4, 0 }
   0x8   : > { %p178_p3 = scmp.eq.s32.totalorder %s1242_s25, 1  ;;  %p1243_p5 = scmp.ge.s32.totalorder %s1698_s24, 1 }
   0x9   : > { %p1771_p4 = por %p2084_p1, %p43_p0  ;;  %p185_p7 = scmp.lt.s32.totalorder %s1698_s24, 3 }
   0xa   : > { %p1776_p6 = por %p178_p3, %p43_p0  ;;  %s1700_s29 = smov [#allocation9]  }
   0xb   : > { %s2088_s26 = scalar_select %p1771_p4, 1, 0 }
   0xc   : > { %s2089_s27 = scalar_select %p1776_p6, 1, 0 }
   0xd   : > { %p1781_p8 = pnand %p1243_p5, %p185_p7  ;;  %s201_s30 = sshll.u32 %s1700_s29, 4  ;;  %s202_s30 = int_to_ptr.vmem [resolvable:$true] %s201_s30 }
   0xe   : > { %s1701_s7 = smov [#allocation11]   ;;  %s1795_s10 = sadd.s32 1, %s1698_s24  }
   0xf   : > { %s2090_s28 = scalar_select %p1781_p8, 1, 0 }
  0x10   : > { %p1428_p10 = pneg %p1781_p8  ;;  %s212_s8 = sshll.u32 %s1701_s7, 4  ;;  %s213_s8 = int_to_ptr.vmem [resolvable:$true] %s212_s8 }
  0x11   : > { %s27_s11 = ssub.s32 %s1698_s24, %s1795_s10  ;;  %s1561_s12 = scalar_lea.vmem %s202_s30, 64 }
  0x12   : > { %p1790_p11 = pnand %p1428_p10, %p2084_p1  ;;  %p1562_p13 = scmp.ne.s32.totalorder %s202_s30, %s1561_s12 }
  0x13   : > { %p1569_p5 = scmp.lt.s32.totalorder %s202_s30, %s202_s30  ;;  %p1570_p7 = scmp.lt.s32.totalorder %s1561_s12, %s1561_s12 }
  0x14   : > { %p1552_p12 = pneg %p1790_p11 }
  0x15   : > { %p1571_p10 = por %p1570_p7, %p1569_p5 }
  0x16   : > { %p1564_p0 = pnand %p1562_p13, %p1552_p12 }
  0x18   : > { %p1565_p3 = pneg %p1564_p0 }
  0x1a   : > { %p1572_p9 = pnand %p1571_p10, %p1565_p3 }
  0x1c   : > { %1575 = shalt.err (!%p1572_p9)
}
  0x1d   : > { %1431 = dma.hbm_to_vmem [thread:$0]  (!%p1790_p11), %s2079_s2, 64, %s202_s30, [#allocation10]  }
  0x1e   : > { %s1587_s15 = scalar_lea.vmem %s213_s8, 128  ;;  %p1595_p13 = scmp.lt.s32.totalorder %s213_s8, %s213_s8 }
  0x1f   : > { %p1588_p1 = scmp.ne.s32.totalorder %s213_s8, %s1587_s15  ;;  %p1596_p0 = scmp.lt.s32.totalorder %s1587_s15, %s1587_s15 }
  0x21   : > { %p1590_p2 = pnand %p1588_p1, %p1552_p12  ;;  %p1597_p4 = por %p1596_p0, %p1595_p13 }
  0x23   : > { %p1591_p6 = pneg %p1590_p2 }
  0x25   : > { %p1598_p8 = pnand %p1597_p4, %p1591_p6 }
  0x27   : > { %1601 = shalt.err (!%p1598_p8)
}
  0x28   : > { %1434 = dma.hbm_to_vmem [thread:$0]  (!%p1790_p11), %s2080_s3, 128, %s213_s8, [#allocation10]  }
  0x29   : > { %p28_p1 = scmp.eq.s32.totalorder %s27_s11, 0  ;;  %s30_s18 = sadd.s32 1, %s1694_s23 }
  0x2a   : > { %p37_p2 = scmp.ne.s32.totalorder %s1694_s23, %s1690_s22  ;;  %p38_p4 = scmp.eq.s32.totalorder %s1698_s24, 0 }
  0x2b   : > { %s1822_s19 = scalar_select %p28_p1, %s1694_s23, %s30_s18  }
  0x2c   : > { %p39_p6 = por %p38_p4, %p37_p2  ;;  %p2092_p8 = scmp.eq.s32.totalorder %s1762_s4, 1 }
  0x2d   : > { %p1445_p12 = scmp.lt.s32.totalorder %s1698_s24, 2  ;;  %s229_s25 = sand.u32 1, %s1694_s23  }
  0x2e   : > { %p1826_p9 = por %p2092_p8, %p37_p2  ;;  %s1247_s29 = sshll.u32 %s229_s25, 3 }
  0x2f   : > { %s1284_s30 = sshll.u32 %s1698_s24, 7  ;;  %s233_s11 = scalar_lea.vmem [#allocation6], %s1247_s29 }
  0x30   : > { %s2093_s20 = scalar_select %p1826_p9, 1, 0 }
  0x31   : > { %s1836_s8 = scalar_lea.hbm %s2077_s0, %s1284_s30  ;;  %s241_s12 = sshll.u32 %s233_s11, 4  ;;  %s242_s12 = int_to_ptr.vmem [resolvable:$true] %s241_s12 }
  0x32   : > { %p1838_p11 = pnand %p1445_p12, %p39_p6  ;;  %s230_s14 = scalar_lea.sflag [#allocation7], %s229_s25 }
  0x33   : > { %s1602_s15 = scalar_lea.hbm %s1836_s8, 128  ;;  %s1607_s18 = scalar_lea.hbm %s2077_s0, 256 }
  0x34   : > { %p1603_p3 = scmp.ne.s32.totalorder %s1836_s8, %s1602_s15  ;;  %p1604_p5 = pneg %p1838_p11 }
  0x35   : > { %p1608_p13 = scmp.lt.s32.totalorder %s1836_s8, %s2077_s0  ;;  %p1609_p0 = scmp.lt.s32.totalorder %s1607_s18, %s1602_s15 }
  0x36   : > { %p1605_p7 = pnand %p1604_p5, %p1603_p3 }
  0x37   : > { %p1610_p1 = por %p1609_p0, %p1608_p13 }
  0x38   : > { %p1606_p10 = pneg %p1605_p7 }
  0x3a   : > { %p1611_p2 = pnand %p1610_p1, %p1606_p10 }
  0x3c   : > { %1614 = shalt.err (!%p1611_p2)
}
  0x3d   : > { %s1615_s7 = scalar_lea.vmem %s242_s12, 128  ;;  %s1702_s25 = smov [#allocation6]  }
  0x3e   : > { %p1616_p4 = scmp.ne.s32.totalorder %s242_s12, %s1615_s7  ;;  %s1620_s9 = sshll.u32 %s1702_s25, 4  ;;  %s1621_s9 = int_to_ptr.vmem [resolvable:$false] %s1620_s9 }
  0x3f   : > { %s1622_s11 = scalar_lea.vmem %s1621_s9, 256  ;;  %p1623_p12 = scmp.lt.s32.totalorder %s242_s12, %s1621_s9 }
  0x40   : > { %p1618_p6 = pnand %p1616_p4, %p1604_p5  ;;  %p1624_p3 = scmp.lt.s32.totalorder %s1622_s11, %s1615_s7 }
  0x42   : > { %p1619_p8 = pneg %p1618_p6  ;;  %p1625_p7 = por %p1624_p3, %p1623_p12 }
  0x44   : > { %p1626_p9 = pnand %p1625_p7, %p1619_p8 }
  0x46   : > { %1629 = shalt.err (!%p1626_p9)
}
  0x47   : > { %1438 = dma.hbm_to_vmem [thread:$0]  (!%p1838_p11), %s1836_s8, 128, %s242_s12, %s230_s14  }
  0x48   : > { %p2095_p10 = scmp.ne.s32.totalorder %s2090_s28, 0 }
  0x49   : > { %s1859_s15 = sand.u32 (!%p2095_p10), 1, %s1690_s22   ;;  %p2096_p5 = scmp.ne.s32.totalorder (!%p2095_p10), %s2088_s26, 0 }
  0x4a   : > { %250 = sbr.rel (%p2095_p10) target bundleno = 1449 (0x5a9), region = 44  ;;  %s1251_s16 = sshll.u32 (!%p2095_p10), %s1859_s15, 3 }
  0x4b   : > { %s253_s17 = scalar_lea.sflag (!%p2095_p10), [#allocation7], %s1859_s15  ;;  %s256_s18 = scalar_lea.vmem (!%p2095_p10), [#allocation6], %s1251_s16 }
  0x4f   : > { %1673 = dma.done.wait (%p2096_p5), %s253_s17, 128  }
  0x50   : > { %1675 = vsyncadd (%p2096_p5), %s253_s17, 4294967168  ;;  %p2097_p9 = scmp.eq.s32.totalorder %s1762_s4, 0 }
  0x52   : > { %1677 = dma.done.wait (%p2097_p9), [#allocation10], 192   ;;  %p2098_p11 = pmov %p2097_p9 }
  0x53   : > { %v1703_v0 = vmov 0.0   ;;  %vm1704_vm0 = vmmov 0   ;;  %vm296_vm1 = vcmask 64512   ;;  %v1879_v1 = vld [vmem:[%s256_s18] sm:$0xff]  ;;  %v371_v2 = vld [vmem:[%s2078_s1] sm:$0xf] }
  0x54   : > { %1679 = vsyncadd (%p2098_p11), [#allocation10], 4294967104  ;;  %1335 = vmatprep.subr.mxu1 %v1703_v0  ;;  %1337 = vmatprep.mubr.msk.f32.mxu1 %vm1704_vm0, %v1703_v0  ;;  %v295_v3 = vld [vmem:[#allocation9] sm:$0xf]  ;;  %vm605_vm2 = vcmask 1043456   ;;  %vm556_vm3 = vcmask 31744  }
  0x55   : > { %1330 = vmatprep.subr.mxu0 %v1703_v0  ;;  %1332 = vmatprep.mubr.msk.f32.mxu0 %vm1704_vm0, %v1703_v0  ;;  %v446_v42 = vld [vmem:[#allocation11] sm:$0xff]  ;;  %s1285_s13 = sshll.u32 %s1762_s4, 7  ;;  %s292_s14 = scalar_lea.vmem [#allocation12], %s1251_s16 }
  0x56   : > { %1336 = vmatpush3.msra.mxu1 %v1879_v1  ;;  %1331 = vmatpush3.msra.mxu0 %v1879_v1  ;;  %s1153_s30 = sshll.u32 %s292_s14, 4  ;;  %s1151_s25 = scalar_lea.hbm %s2083_s6, %s1285_s13  ;;  %s1154_s30 = int_to_ptr.vmem [resolvable:$true] %s1153_s30 }
  0x57   : > { %1338 = vmatmul.mubr.msk.f32.vlgmr.msra.gmra.mxu1 %vm296_vm1, %v371_v2  ;;  %1333 = vmatmul.mubr.msk.f32.vlgmr.msra.gmra.mxu0 %vm296_vm1, %v295_v3  ;;  %s1139_s9 = scalar_lea.sflag [#allocation8], %s1859_s15  ;;  %s1630_s11 = scalar_lea.vmem %s1154_s30, 128 }
  0x58   : > { %1340 = vmatprep.subr.mxu0 %v1703_v0  ;;  %1342 = vmatprep.mubr.msk.f32.mxu0 %vm1704_vm0, %v1703_v0  ;;  %p1631_p13 = scmp.ne.s32.totalorder %s1154_s30, %s1630_s11  ;;  %p2099_p0 = scmp.ne.s32.totalorder %s2093_s20, 0 }
  0x59   : > { %1341 = vmatpush3.msra.mxu0 %v1879_v1  ;;  %s1705_s4 = smov [#allocation12]  }
  0x5a   : > { %1371 = vmatprep.subr.mxu0 %v1703_v0  ;;  %p1632_p1 = pnand %p1631_p13, %p2099_p0  ;;  %s1634_s16 = sshll.u32 %s1705_s4, 4  ;;  %s1635_s16 = int_to_ptr.vmem [resolvable:$false] %s1634_s16 }
  0x5b   : > { %1343 = vmatmul.mubr.msk.f32.vlgmr.msra.gmra.mxu0 %vm296_vm1, %v446_v42  ;;  %s1636_s17 = scalar_lea.vmem %s1635_s16, 256  ;;  %p1637_p4 = scmp.lt.s32.totalorder %s1154_s30, %s1635_s16 }
  0x5c   : > { %1403 = vmatprep.mubr.msk.f32.mxu0 %vm1704_vm0, %v1703_v0  ;;  %p1633_p2 = pneg %p1632_p1  ;;  %p1638_p6 = scmp.lt.s32.totalorder %s1636_s17, %s1630_s11 }
  0x5e   : > { %p1639_p8 = por %p1638_p6, %p1637_p4 }
  0x60   : > { %p1640_p12 = pnand %p1639_p8, %p1633_p2 }
 0x117   : > { %v441_v4 = vpop.f32.mrf.mxu1  ;;  %v366_v5 = vpop.f32.mrf.mxu0 }
 0x118   : > { %445 = vst [vmem:[#allocation3] sm:$0xf] %v441_v4  ;;  %370 = vst [vmem:[#allocation2] sm:$0xf] %v366_v5 }
 0x119   : > { %v1339_v6 = vpop.f32.mrf.mxu1  ;;  %v1334_v7 = vpop.f32.mrf.mxu0 }
 0x11f   : > { %v522_v8 = vld [vmem:[#allocation3] sm:$0xf]  ;;  %v523_v9 = vld [vmem:[#allocation2] sm:$0xf] }
 0x120   : > { %524 = vxpose.xlu0.b32.start.end [1/1] (short) %v522_v8, 128  ;;  %1345 = vmatprep.subr.msk.mxu1 %vm605_vm2, %v523_v9 }
 0x121   : > { %1346 = vmatpush3.msk.msra.mxu1 %vm605_vm2, %v523_v9 }
 0x122   : > { %1406 = vmatprep.subr.mxu1 %v1703_v0 }
 0x19c   : > { %v540_v10 = vpop.trf.xlu0 }
 0x19d   : > { %1347 = vmatprep.mubr.msk.f32.mxu1 %vm556_vm3, %v540_v10 }
 0x1a0   : > { %v541_v11 = vpop.trf.xlu0 }
 0x1a1   : > { %1348 = vmatmul.mubr.msk.f32.vlgmr.msra.gmra.mxu1 %vm556_vm3, %v541_v11 }
 0x1a4   : > { %v542_v12 = vpop.trf.xlu0 }
 0x1a5   : > { %1350 = vmatprep.mubr.msk.f32.mxu1 %vm556_vm3, %v542_v12 }
 0x1a8   : > { %v543_v13 = vpop.trf.xlu0 }
 0x1a9   : > { %1351 = vmatmul.mubr.msk.f32.gmra.mxu1 %vm556_vm3, %v543_v13 }
 0x1ac   : > { %v544_v14 = vpop.trf.xlu0 }
 0x1ad   : > { %1353 = vmatprep.mubr.msk.f32.mxu1 %vm556_vm3, %v544_v14 }
 0x1b0   : > { %v545_v15 = vpop.trf.xlu0 }
 0x1b1   : > { %1354 = vmatmul.mubr.msk.f32.gmra.mxu1 %vm556_vm3, %v545_v15 }
 0x1b4   : > { %v546_v16 = vpop.trf.xlu0 }
 0x1b5   : > { %1356 = vmatprep.mubr.msk.f32.mxu1 %vm556_vm3, %v546_v16 }
 0x1b8   : > { %v547_v17 = vpop.trf.xlu0 }
 0x1b9   : > { %1357 = vmatmul.mubr.msk.f32.gmra.mxu1 %vm556_vm3, %v547_v17 }
 0x1bc   : > { %v548_v18 = vpop.trf.xlu0 }
 0x1bd   : > { %1359 = vmatprep.mubr.msk.f32.mxu1 %vm556_vm3, %v548_v18 }
 0x1c0   : > { %v549_v19 = vpop.trf.xlu0 }
 0x1c1   : > { %1360 = vmatmul.mubr.msk.f32.gmra.mxu1 %vm556_vm3, %v549_v19 }
 0x1c4   : > { %v550_v20 = vpop.trf.xlu0 }
 0x1c5   : > { %1362 = vmatprep.mubr.msk.f32.mxu1 %vm556_vm3, %v550_v20 }
 0x1c8   : > { %v551_v21 = vpop.trf.xlu0 }
 0x1c9   : > { %1363 = vmatmul.mubr.msk.f32.gmra.mxu1 %vm556_vm3, %v551_v21 }
 0x1cc   : > { %v552_v22 = vpop.trf.xlu0 }
 0x1cd   : > { %1365 = vmatprep.mubr.msk.f32.mxu1 %vm556_vm3, %v552_v22 }
 0x1d0   : > { %v553_v23 = vpop.trf.xlu0 }
 0x1d1   : > { %1366 = vmatmul.mubr.msk.f32.gmra.mxu1 %vm556_vm3, %v553_v23 }
 0x1d4   : > { %v554_v24 = vpop.trf.xlu0 }
 0x1d5   : > { %1368 = vmatprep.mubr.msk.f32.mxu1 %vm556_vm3, %v554_v24 }
 0x1d8   : > { %v555_v25 = vpop.trf.xlu0 }
 0x1d9   : > { %1369 = vmatmul.mubr.msk.f32.gmra.mxu1 %vm556_vm3, %v555_v25 }
 0x1da   : > { %1408 = vmatprep.mubr.msk.f32.mxu1 %vm1704_vm0, %v1703_v0 }
 0x261   : > { %v1914_v26 = vpop.f32.mrf.mxu1 }
 0x263   : > { %v1916_v27 = vpop.f32.mrf.mxu1 }
 0x269   : > { %v1918_v28 = vpop.f32.mrf.mxu1 }
 0x26b   : > { %v1920_v29 = vpop.f32.mrf.mxu1 }
 0x271   : > { %v1922_v30 = vpop.f32.mrf.mxu1 }
 0x273   : > { %v1924_v31 = vpop.f32.mrf.mxu1 }
 0x279   : > { %v1926_v32 = vpop.f32.mrf.mxu1 }
 0x27b   : > { %v1928_v33 = vpop.f32.mrf.mxu1 }
 0x281   : > { %v1361_v34 = vpop.f32.mrf.mxu1 }
 0x283   : > { %v1930_v35 = vpop.f32.mrf.mxu1 }
 0x289   : > { %v1364_v36 = vpop.f32.mrf.mxu1 }
 0x28b   : > { %v725_v37 = vpop.f32.mrf.mxu1 }
 0x291   : > { %v1367_v38 = vpop.f32.mrf.mxu1 }
 0x292   : > { %780 = vmax.xlane.f32.xlu1 %v1367_v38 }
 0x293   : > { %v735_v39 = vpop.f32.mrf.mxu1 }
 0x296   : > { %778 = vmax.xlane.f32.xlu1 %v735_v39 }
 0x299   : > { %v1370_v40 = vpop.f32.mrf.mxu1 }
 0x29a   : > { %776 = vmax.xlane.f32.xlu1 %v1364_v36  ;;  %784 = vmax.xlane.f32.xlu0 %v1370_v40 }
 0x29b   : > { %v745_v41 = vpop.f32.mrf.mxu1 }
 0x29e   : > { %774 = vmax.xlane.f32.xlu1 %v725_v37 }
 0x2a2   : > { %772 = vmax.xlane.f32.xlu1 %v1361_v34 }
 0x2a6   : > { %770 = vmax.xlane.f32.xlu1 %v1930_v35 }
 0x2aa   : > { %768 = vmax.xlane.f32.xlu1 %v1926_v32 }
 0x2ae   : > { %782 = vmax.xlane.f32.xlu1 %v745_v41 }
 0x2b2   : > { %766 = vmax.xlane.f32.xlu1 %v1928_v33 }
 0x2b6   : > { %764 = vmax.xlane.f32.xlu1 %v1922_v30 }
 0x2ba   : > { %762 = vmax.xlane.f32.xlu1 %v1924_v31 }
 0x2be   : > { %760 = vmax.xlane.f32.xlu1 %v1918_v28 }
 0x2c2   : > { %758 = vmax.xlane.f32.xlu1 %v1920_v29 }
 0x2c6   : > { %756 = vmax.xlane.f32.xlu1 %v1914_v26 }
 0x2ca   : > { %754 = vmax.xlane.f32.xlu1 %v1916_v27 }
 0x31b   : > { %v781_v43 = vpop.xlane.xlu1 %780 }
 0x31c   : > { %v799_v55 = vsub.f32 %v1367_v38, %v781_v43 }
 0x31e   : > { %v828_v58 = vmul.f32 1.442695, %v799_v55 }
 0x31f   : > { %v779_v44 = vpop.xlane.xlu1 %778 }
 0x320   : > { %v798_v59 = vsub.f32 %v735_v39, %v779_v44 }
 0x322   : > { %v826_v62 = vmul.f32 1.442695, %v798_v59 }
 0x323   : > { %v777_v45 = vpop.xlane.xlu1 %776  ;;  %v785_v60 = vpop.xlane.xlu0 %784 }
 0x324   : > { %v797_v48 = vsub.f32 %v1364_v36, %v777_v45  ;;  %v801_v63 = vsub.f32 %v1370_v40, %v785_v60  ;;  %v1995_v45 = vpop.f32.mrf.mxu0 }
 0x326   : > { %v824_v52 = vmul.f32 1.442695, %v797_v48  ;;  %v832_v4 = vmul.f32 1.442695, %v801_v63 }
 0x327   : > { %v775_v46 = vpop.xlane.xlu1 %774 }
 0x328   : > { %v796_v53 = vsub.f32 %v725_v37, %v775_v46  ;;  %v1344_v46 = vpop.f32.mrf.mxu0 }
 0x32a   : > { %v822_v56 = vmul.f32 1.442695, %v796_v53 }
 0x32b   : > { %v773_v47 = vpop.xlane.xlu1 %772 }
 0x32c   : > { %v795_v49 = vsub.f32 %v1361_v34, %v773_v47 }
 0x32e   : > { %v820_v50 = vmul.f32 1.442695, %v795_v49 }
 0x32f   : > { %v771_v51 = vpop.xlane.xlu1 %770 }
 0x330   : > { %1486 = vpow2.f32 %v820_v50  ;;  %v794_v8 = vsub.f32 %v1930_v35, %v771_v51 }
 0x331   : > { %1488 = vpow2.f32 %v824_v52 }
 0x332   : > { %1490 = vpow2.f32 %v822_v56  ;;  %v818_v13 = vmul.f32 1.442695, %v794_v8 }
 0x333   : > { %v769_v54 = vpop.xlane.xlu1 %768  ;;  %1492 = vpow2.f32 %v828_v58 }
 0x334   : > { %1494 = vpow2.f32 %v826_v62  ;;  %v793_v11 = vsub.f32 %v1926_v32, %v769_v54 }
 0x335   : > { %1496 = vpow2.f32 %v832_v4 }
 0x336   : > { %v816_v15 = vmul.f32 1.442695, %v793_v11 }
 0x337   : > { %v783_v57 = vpop.xlane.xlu1 %782 }
 0x338   : > { %v800_v5 = vsub.f32 %v745_v41, %v783_v57 }
 0x33a   : > { %v830_v9 = vmul.f32 1.442695, %v800_v5 }
 0x33b   : > { %v767_v61 = vpop.xlane.xlu1 %766 }
 0x33c   : > { %1498 = vpow2.f32 %v830_v9  ;;  %v792_v17 = vsub.f32 %v1928_v33, %v767_v61 }
 0x33d   : > { %v1944_v2 = vpop.eup %1486  ;;  %1500 = vpow2.f32 %v818_v13 }
 0x33e   : > { %852 = vadd.xlane.f32.xlu1 %v1944_v2  ;;  %v1947_v6 = vpop.eup %1488  ;;  %1502 = vpow2.f32 %v816_v15  ;;  %v814_v23 = vmul.f32 1.442695, %v792_v17 }
 0x33f   : > { %v765_v3 = vpop.xlane.xlu1 %764  ;;  %v1951_v10 = vpop.eup %1490 }
 0x340   : > { %v1955_v14 = vpop.eup %1492  ;;  %v791_v21 = vsub.f32 %v1922_v30, %v765_v3 }
 0x341   : > { %v1960_v19 = vpop.eup %1494 }
 0x342   : > { %856 = vadd.xlane.f32.xlu1 %v1947_v6  ;;  %v1497_v24 = vpop.eup %1496  ;;  %v812_v25 = vmul.f32 1.442695, %v791_v21 }
 0x343   : > { %v763_v7 = vpop.xlane.xlu1 %762 }
 0x344   : > { %v790_v33 = vsub.f32 %v1924_v31, %v763_v7 }
 0x346   : > { %854 = vadd.xlane.f32.xlu1 %v1951_v10  ;;  %v810_v36 = vmul.f32 1.442695, %v790_v33 }
 0x347   : > { %v761_v12 = vpop.xlane.xlu1 %760 }
 0x348   : > { %v789_v37 = vsub.f32 %v1918_v28, %v761_v12 }
 0x349   : > { %v1499_v34 = vpop.eup %1498 }
 0x34a   : > { %860 = vadd.xlane.f32.xlu1 %v1955_v14  ;;  %v1967_v30 = vpop.eup %1500  ;;  %v808_v39 = vmul.f32 1.442695, %v789_v37 }
 0x34b   : > { %v759_v16 = vpop.xlane.xlu1 %758  ;;  %v1970_v38 = vpop.eup %1502 }
 0x34c   : > { %v788_v18 = vsub.f32 %v1920_v29, %v759_v16 }
 0x34e   : > { %v806_v20 = vmul.f32 1.442695, %v788_v18  ;;  %858 = vadd.xlane.f32.xlu1 %v1960_v19 }
 0x34f   : > { %v757_v22 = vpop.xlane.xlu1 %756 }
 0x350   : > { %1504 = vpow2.f32 %v806_v20  ;;  %v787_v31 = vsub.f32 %v1914_v26, %v757_v22 }
 0x351   : > { %1506 = vpow2.f32 %v814_v23 }
 0x352   : > { %864 = vadd.xlane.f32.xlu1 %v1497_v24  ;;  %1508 = vpow2.f32 %v812_v25 }
 0x353   : > { %v755_v32 = vpop.xlane.xlu1 %754 }
 0x354   : > { %v786_v29 = vsub.f32 %v1916_v27, %v755_v32  ;;  %v804_v27 = vmul.f32 1.442695, %v787_v31  ;;  %v973_v31 = vld [vmem:[%s2082_s5] sm:$0xf] }
 0x356   : > { %v802_v35 = vmul.f32 1.442695, %v786_v29  ;;  %862 = vadd.xlane.f32.xlu1 %v1499_v34 }
 0x358   : > { %1510 = vpow2.f32 %v802_v35 }
 0x359   : > { %1512 = vpow2.f32 %v810_v36 }
 0x35a   : > { %850 = vadd.xlane.f32.xlu1 %v1967_v30  ;;  %1514 = vpow2.f32 %v808_v39 }
 0x35b   : > { %1516 = vpow2.f32 %v804_v27 }
 0x35d   : > { %v1973_v40 = vpop.eup %1504 }
 0x35e   : > { %848 = vadd.xlane.f32.xlu1 %v1970_v38  ;;  %838 = vadd.xlane.f32.xlu0 %v1973_v40  ;;  %v1977_v28 = vpop.eup %1506 }
 0x35f   : > { %v1980_v41 = vpop.eup %1508 }
 0x362   : > { %846 = vadd.xlane.f32.xlu1 %v1977_v28 }
 0x365   : > { %v1982_v42 = vpop.eup %1510 }
 0x366   : > { %844 = vadd.xlane.f32.xlu1 %v1980_v41  ;;  %834 = vadd.xlane.f32.xlu0 %v1982_v42  ;;  %v1986_v26 = vpop.eup %1512 }
 0x367   : > { %v1989_v43 = vpop.eup %1514 }
 0x368   : > { %v1992_v44 = vpop.eup %1516 }
 0x36a   : > { %842 = vadd.xlane.f32.xlu1 %v1986_v26 }
 0x36e   : > { %840 = vadd.xlane.f32.xlu1 %v1989_v43 }
 0x372   : > { %836 = vadd.xlane.f32.xlu1 %v1992_v44 }
 0x3c7   : > { %v853_v47 = vpop.xlane.xlu1 %852 }
 0x3cb   : > { %v857_v48 = vpop.xlane.xlu1 %856 }
 0x3cf   : > { %v855_v49 = vpop.xlane.xlu1 %854 }
 0x3d3   : > { %v861_v50 = vpop.xlane.xlu1 %860 }
 0x3d7   : > { %v859_v51 = vpop.xlane.xlu1 %858 }
 0x3db   : > { %v865_v52 = vpop.xlane.xlu1 %864 }
 0x3dc   : > { %1518 = vrcp.f32 %v865_v52 }
 0x3dd   : > { %1520 = vrcp.f32 %v861_v50 }
 0x3df   : > { %v863_v53 = vpop.xlane.xlu1 %862 }
 0x3e0   : > { %1522 = vrcp.f32 %v863_v53 }
 0x3e1   : > { %1524 = vrcp.f32 %v859_v51 }
 0x3e2   : > { %1526 = vrcp.f32 %v857_v48 }
 0x3e3   : > { %v851_v54 = vpop.xlane.xlu1 %850  ;;  %1528 = vrcp.f32 %v855_v49 }
 0x3e4   : > { %1530 = vrcp.f32 %v853_v47 }
 0x3e5   : > { %1532 = vrcp.f32 %v851_v54 }
 0x3e7   : > { %v849_v55 = vpop.xlane.xlu1 %848  ;;  %v839_v9 = vpop.xlane.xlu0 %838 }
 0x3e8   : > { %1534 = vrcp.f32 %v849_v55 }
 0x3e9   : > { %v1519_v56 = vpop.eup %1518 }
 0x3ea   : > { %v897_v57 = vmul.f32 %v1519_v56, %v1497_v24  ;;  %v1521_v59 = vpop.eup %1520 }
 0x3eb   : > { %v847_v58 = vpop.xlane.xlu1 %846  ;;  %v895_v3 = vmul.f32 %v1521_v59, %v1955_v14 }
 0x3ec   : > { %1372 = vmatpush3.msra.mxu0 %v897_v57  ;;  %1536 = vrcp.f32 %v847_v58 }
 0x3ed   : > { %v1523_v60 = vpop.eup %1522  ;;  %1373 = vmatprep.subr.mxu0 %v1703_v0 }
 0x3ee   : > { %v896_v61 = vmul.f32 %v1523_v60, %v1499_v34  ;;  %v1525_v62 = vpop.eup %1524 }
 0x3ef   : > { %v845_v63 = vpop.xlane.xlu1 %844  ;;  %v1527_v4 = vpop.eup %1526  ;;  %v894_v5 = vmul.f32 %v1525_v62, %v1960_v19 }
 0x3f0   : > { %1374 = vmatpush3.msra.mxu0 %v896_v61  ;;  %1538 = vrcp.f32 %v845_v63  ;;  %v1529_v7 = vpop.eup %1528  ;;  %v893_v11 = vmul.f32 %v1527_v4, %v1947_v6  ;;  %v835_v16 = vpop.xlane.xlu0 %834 }
 0x3f1   : > { %1375 = vmatprep.subr.mxu0 %v1703_v0  ;;  %v1531_v12 = vpop.eup %1530  ;;  %v892_v13 = vmul.f32 %v1529_v7, %v1951_v10 }
 0x3f2   : > { %1376 = vmatpush3.msra.mxu0 %v895_v3  ;;  %v1533_v14 = vpop.eup %1532  ;;  %v891_v17 = vmul.f32 %v1531_v12, %v1944_v2 }
 0x3f3   : > { %1377 = vmatprep.subr.mxu0 %v1703_v0  ;;  %v843_v8 = vpop.xlane.xlu1 %842  ;;  %v890_v6 = vmul.f32 %v1533_v14, %v1967_v30 }
 0x3f4   : > { %1540 = vrcp.f32 %v843_v8  ;;  %1378 = vmatpush3.msra.mxu0 %v894_v5 }
 0x3f5   : > { %1379 = vmatprep.subr.mxu0 %v1703_v0  ;;  %1542 = vrcp.f32 %v839_v9  ;;  %v1535_v18 = vpop.eup %1534 }
 0x3f6   : > { %1380 = vmatpush3.msra.mxu0 %v893_v11  ;;  %v889_v20 = vmul.f32 %v1535_v18, %v1970_v38 }
 0x3f7   : > { %1381 = vmatprep.subr.mxu0 %v1703_v0  ;;  %v841_v15 = vpop.xlane.xlu1 %840 }
 0x3f8   : > { %1544 = vrcp.f32 %v841_v15  ;;  %1382 = vmatpush3.msra.mxu0 %v892_v13 }
 0x3f9   : > { %1383 = vmatprep.subr.mxu0 %v1703_v0  ;;  %v1537_v19 = vpop.eup %1536  ;;  %1546 = vrcp.f32 %v835_v16 }
 0x3fa   : > { %1384 = vmatpush3.msra.mxu0 %v891_v17  ;;  %v888_v2 = vmul.f32 %v1537_v19, %v1977_v28 }
 0x3fb   : > { %1385 = vmatprep.subr.mxu0 %v1703_v0  ;;  %v837_v10 = vpop.xlane.xlu1 %836 }
 0x3fc   : > { %1548 = vrcp.f32 %v837_v10  ;;  %1386 = vmatpush3.msra.mxu0 %v890_v6 }
 0x3fd   : > { %1387 = vmatprep.subr.mxu0 %v1703_v0  ;;  %v1539_v21 = vpop.eup %1538 }
 0x3fe   : > { %1388 = vmatpush3.msra.mxu0 %v889_v20  ;;  %v887_v22 = vmul.f32 %v1539_v21, %v1980_v41 }
 0x3ff   : > { %1389 = vmatprep.subr.mxu0 %v1703_v0 }
 0x400   : > { %1390 = vmatpush3.msra.mxu0 %v888_v2 }
 0x401   : > { %v1541_v23 = vpop.eup %1540  ;;  %1391 = vmatprep.subr.mxu0 %v1703_v0 }
 0x402   : > { %1392 = vmatpush3.msra.mxu0 %v887_v22  ;;  %v886_v24 = vmul.f32 %v1541_v23, %v1986_v26  ;;  %v1543_v25 = vpop.eup %1542 }
 0x403   : > { %1393 = vmatprep.subr.mxu0 %v1703_v0  ;;  %v884_v34 = vmul.f32 %v1543_v25, %v1973_v40 }
 0x404   : > { %1394 = vmatpush3.msra.mxu0 %v886_v24 }
 0x405   : > { %v1545_v32 = vpop.eup %1544  ;;  %1395 = vmatprep.subr.mxu0 %v1703_v0 }
 0x406   : > { %v885_v33 = vmul.f32 %v1545_v32, %v1989_v43  ;;  %v1547_v29 = vpop.eup %1546 }
 0x407   : > { %v882_v37 = vmul.f32 %v1547_v29, %v1982_v42  ;;  %v1134_v42 = vcombine.high %v1879_v1, %v1879_v1 }
 0x408   : > { %1396 = vmatpush3.msra.mxu0 %v885_v33 }
 0x409   : > { %v1549_v35 = vpop.eup %1548  ;;  %1397 = vmatprep.subr.mxu0 %v1703_v0 }
 0x40a   : > { %1398 = vmatpush3.msra.mxu0 %v884_v34  ;;  %v883_v36 = vmul.f32 %v1549_v35, %v1992_v44 }
 0x40b   : > { %1399 = vmatprep.subr.mxu0 %v1703_v0 }
 0x40c   : > { %1400 = vmatpush3.msra.mxu0 %v883_v36 }
 0x40d   : > { %1401 = vmatprep.subr.mxu0 %v1703_v0 }
 0x40e   : > { %1402 = vmatpush3.msra.mxu0 %v882_v37 }
 0x40f   : > { %1404 = vmatmul.mubr.f32.vlgmr.msra.gmra.mxu0 %v1995_v45  ;;  %1411 = vmatprep.subr.mxu0 %v1703_v0 }
 0x410   : > { %1413 = vmatprep.mubr.msk.f32.mxu0 %vm1704_vm0, %v1703_v0 }
 0x4cf   : > { %v966_v30 = vpop.f32.mrf.mxu0 }
 0x4d0   : > { %vm974_vm4 = vcmp.ge.f32.partialorder %v966_v30, 0.0  ;;  %v975_v38 = vmul.f32 0.1, %v966_v30 }
 0x4d1   : > { %v1405_v39 = vpop.f32.mrf.mxu0 }
 0x4d2   : > { %v976_v40 = vsel %vm974_vm4, %v966_v30, %v975_v38 }
 0x4d3   : > { %v1058_v27 = vrot.slane %v976_v40, 4  ;;  %1407 = vmatpush3.msk.msra.mxu1 %vm605_vm2, %v976_v40 }
 0x4d4   : > { %1409 = vmatmul.mubr.msk.f32.vlgmr.msra.gmra.mxu1 %vm556_vm3, %v973_v31 }
 0x4d5   : > { %1412 = vmatpush3.msk.msra.mxu0 %vm605_vm2, %v1058_v27 }
 0x4d6   : > { %1414 = vmatmul.mubr.msk.f32.vlgmr.msra.gmra.mxu0 %vm556_vm3, %v973_v31 }
 0x594   : > { %v1049_v0 = vpop.f32.mrf.mxu1 }
 0x595   : > { %vm1053_vm5 = vcmp.ge.f32.partialorder %v1049_v0, 0.0  ;;  %v1054_v28 = vmul.f32 0.1, %v1049_v0 }
 0x596   : > { %v1127_v41 = vpop.f32.mrf.mxu0  ;;  %v1410_v26 = vpop.f32.mrf.mxu1 }
 0x597   : > { %v1055_v43 = vsel %vm1053_vm5, %v1049_v0, %v1054_v28  ;;  %vm1131_vm6 = vcmp.ge.f32.partialorder %v1127_v41, 0.0  ;;  %v1132_v44 = vmul.f32 0.1, %v1127_v41 }
 0x598   : > { %v1056_v45 = vadd.f32 %v1055_v43, %v1879_v1  ;;  %v1415_v46 = vpop.f32.mrf.mxu0 }
 0x599   : > { %v1133_v47 = vsel %vm1131_vm6, %v1127_v41, %v1132_v44 }
 0x59a   : > { %v1136_v48 = vadd.f32 %v1134_v42, %v1133_v47  ;;  %1057 = vst [vmem:[%s292_s14] sm:$0xf] %v1056_v45 }
 0x59c   : > { %1137 = vst [vmem:[%s292_s14 + $0x4] sm:$0xf] %v1136_v48 }
 0x59d   : > { %1643 = shalt.err (!%p1640_p12)
}
 0x59e   : > { %s1644_s18 = scalar_lea.hbm %s1151_s25, 128  ;;  %s1648_s28 = scalar_lea.hbm %s2083_s6, 256 }
 0x59f   : > { %p1645_p3 = scmp.ne.s32.totalorder %s1151_s25, %s1644_s18  ;;  %p1649_p5 = scmp.lt.s32.totalorder %s1151_s25, %s2083_s6 }
 0x5a0   : > { %p1650_p9 = scmp.lt.s32.totalorder %s1648_s28, %s1644_s18 }
 0x5a1   : > { %p1646_p7 = pnand %p1645_p3, %p2099_p0 }
 0x5a2   : > { %p1651_p11 = por %p1650_p9, %p1649_p5 }
 0x5a3   : > { %p1647_p10 = pneg %p1646_p7 }
 0x5a5   : > { %p1652_p13 = pnand %p1651_p11, %p1647_p10 }
 0x5a7   : > { %1655 = shalt.err (!%p1652_p13)
}
 0x5a8   : > { %1426 = dma.vmem_to_hbm [thread:$0]  (%p2099_p0), %s1154_s30, 128, %s1151_s25, %s1139_s9  }
 0x5a9 PF: > { %s1165_s13 = sand.u32 1, %s1686_s21   ;;  %p2100_p1 = scmp.ne.s32.totalorder %s2089_s27, 0 }
 0x5aa   : > { %p2101_p2 = scmp.ge.s32.totalorder %s1698_s24, 2  ;;  %s1166_s14 = scalar_lea.sflag [#allocation8], %s1165_s13 }
 0x5ac   : > { %p1440_p4 = pnand %p2101_p2, %p2100_p1 }
 0x5ae   : > { %p1441_p6 = pneg %p1440_p4 }
 0x5b0   : > { %1681 = dma.done.wait (%p1441_p6), %s1166_s14, 128  }
 0x5b1   : > { %1683 = vsyncadd (%p1441_p6), %s1166_s14, 4294967168  ;;  %p20_p8 = scmp.ge.s32.totalorder %s1795_s10, 4   ;;  %s2102_s21 = smov %s1690_s22 }
 0x5b2   : > { %s2103_s22 = smov %s1694_s23  ;;  %s2104_s23 = smov %s1822_s19 }
 0x5b3   : > { %s2105_s24 = smov %s1795_s10  ;;  %22 = sbr.rel (!%p20_p8) target bundleno = 6 (0x6), region = 97 }
 0x5b8   :  { %1171 = vsyncpa [#allocation7], 1 }
 0x5b9   :  { %1173 = vsyncpa [#allocation7 + $0x1], 1 }
 0x5ba   :  { %1174 = vsyncpa [#allocation10], 1 }
 0x5bb   :  { %1175 = vsyncpa [#allocation8], 1 }
 0x5bc   :  { %1177 = vsyncpa [#allocation8 + $0x1], 1 }

</bundles_post_ra>
